<compile_context>
chip_gen: v7x
topology: tpu7x:2x2x1
jax: 0.10.0
libtpu: 0.0.40
codegen_flags: <defaults>
</compile_context>

<pallas_src>
import functools

import jax
import jax.numpy as jnp
from jax import lax
from jax.experimental import pallas as pl
from jax.experimental.pallas import tpu as pltpu


# -----------------------------------------------------------------------------
# Helpers
# -----------------------------------------------------------------------------
def _round_up(x, m):
    return ((x + m - 1) // m) * m


def _largest_divisor(x, candidates):
    for c in candidates:
        if x % c == 0:
            return c
    return None


# Raise the scoped-VMEM cap above the 16/32 MiB defaults (v5e/v6e) while
# staying safely under v7x's 64 MiB physical VMEM.
_VMEM_LIMIT = 48 * 1024 * 1024


# -----------------------------------------------------------------------------
# Fused matmul + folded-BN affine (+ReLU, + optional fused residual) kernel
#   out = act((A @ B) * scale + bias [+ residual])
# A, B (and residual) are bf16; accumulation is f32 in VMEM scratch.
# -----------------------------------------------------------------------------
def _mm_affine_kernel(a_ref, b_ref, s_ref, c_ref, o_ref, acc_ref, *, relu):
    @pl.when(pl.program_id(2) == 0)
    def _init():
        acc_ref[...] = jnp.zeros_like(acc_ref)

    acc_ref[...] += jnp.dot(a_ref[...], b_ref[...],
                            preferred_element_type=jnp.float32)

    @pl.when(pl.program_id(2) == pl.num_programs(2) - 1)
    def _fin():
        y = acc_ref[...] * s_ref[...] + c_ref[...]
        if relu:
            y = jnp.maximum(y, 0.0)
        o_ref[...] = y.astype(o_ref.dtype)


def _mm_affine_res_kernel(a_ref, b_ref, s_ref, c_ref, r_ref, o_ref, acc_ref,
                          *, relu):
    @pl.when(pl.program_id(2) == 0)
    def _init():
        acc_ref[...] = jnp.zeros_like(acc_ref)

    acc_ref[...] += jnp.dot(a_ref[...], b_ref[...],
                            preferred_element_type=jnp.float32)

    @pl.when(pl.program_id(2) == pl.num_programs(2) - 1)
    def _fin():
        y = acc_ref[...] * s_ref[...] + c_ref[...] + r_ref[...].astype(jnp.float32)
        if relu:
            y = jnp.maximum(y, 0.0)
        o_ref[...] = y.astype(o_ref.dtype)


def matmul_affine(a, b, scale, bias, *, relu, residual=None,
                  out_dtype=jnp.bfloat16):
    """act((a @ b) * scale + bias [+ residual]) as one tiled Pallas kernel."""
    m, k = a.shape
    k2, n = b.shape
    assert k == k2

    a = a.astype(jnp.bfloat16)
    b = b.astype(jnp.bfloat16)

    # Lane-dense output: pad only the *small* B / scale / bias up to 128 lanes.
    n_pad = max(128, _round_up(n, 128))
    if n_pad != n:
        b = jnp.pad(b, ((0, 0), (0, n_pad - n)))
        scale = jnp.pad(scale, ((0, 0), (0, n_pad - n)))
        bias = jnp.pad(bias, ((0, 0), (0, n_pad - n)))
        assert residual is None  # residual channels here are always >=256

    # Never jnp.pad the big A operand: M = N*OH*OW is a multiple of 8 in this
    # network, so we pick tm from divisors of M (tiny defensive fallback kept).
    if m % 8 != 0:
        m_pad = _round_up(m, 8)
        a = jnp.pad(a, ((0, m_pad - m), (0, 0)))
        if residual is not None:
            residual = jnp.pad(residual, ((0, m_pad - m), (0, 0)))
    else:
        m_pad = m

    tm = _largest_divisor(m_pad, (512, 256, 128, 64, 32, 16, 8))
    tn = _largest_divisor(n_pad, (512, 256, 128))
    tk = _largest_divisor(k, (512, 256, 128)) or k  # full-extent K is legal

    # v7x has two TensorCores: make sure the parallel (M, N) grid has at least
    # two cells whenever possible so both cores get work on the deep layers.
    if (m_pad // tm) * (n_pad // tn) == 1:
        if tn > 128:
            tn //= 2
        elif tm > 8:
            tm //= 2

    grid = (m_pad // tm, n_pad // tn, k // tk)

    inputs = [a, b, scale, bias]
    in_specs = [
        pl.BlockSpec((tm, tk), lambda i, j, kk: (i, kk)),
        pl.BlockSpec((tk, tn), lambda i, j, kk: (kk, j)),
        pl.BlockSpec((1, tn), lambda i, j, kk: (0, j)),
        pl.BlockSpec((1, tn), lambda i, j, kk: (0, j)),
    ]
    if residual is not None:
        inputs.append(residual.astype(jnp.bfloat16))
        in_specs.append(pl.BlockSpec((tm, tn), lambda i, j, kk: (i, j)))
        kernel = functools.partial(_mm_affine_res_kernel, relu=relu)
    else:
        kernel = functools.partial(_mm_affine_kernel, relu=relu)

    out = pl.pallas_call(
        kernel,
        out_shape=jax.ShapeDtypeStruct((m_pad, n_pad), out_dtype),
        grid=grid,
        in_specs=in_specs,
        out_specs=pl.BlockSpec((tm, tn), lambda i, j, kk: (i, j)),
        scratch_shapes=[pltpu.VMEM((tm, tn), jnp.float32)],
        compiler_params=pltpu.CompilerParams(
            dimension_semantics=("parallel", "parallel", "arbitrary"),
            vmem_limit_bytes=_VMEM_LIMIT),
    )(*inputs)

    if (m_pad, n_pad) != (m, n):
        out = out[:m, :n]
    return out


def conv1x1_bn(x, w, scale, bias, *, relu, residual=None):
    """1x1 conv (stride 1) + folded BN (+ReLU, + fused residual) in NHWC."""
    n, h, wd, cin = x.shape
    cout = w.shape[-1]
    a = x.reshape(n * h * wd, cin)
    r = None if residual is None else residual.reshape(n * h * wd, cout)
    y = matmul_affine(a, w.reshape(cin, cout), scale, bias, relu=relu,
                      residual=r)
    return y.reshape(n, h, wd, cout)


# -----------------------------------------------------------------------------
# Direct spatial conv kernel (no im2col in HBM): the whole padded image block
# is VMEM-resident; the K*K taps are unit-stride in-kernel slices, each feeding
# one MXU dot.  Stride-2 convs are pre-rewritten (wrapper) as stride-1 convs on
# a space-to-depth input, so the kernel only ever sees stride 1.
# -----------------------------------------------------------------------------
def _direct_conv_kernel(x_ref, w_ref, s_ref, c_ref, o_ref, *, taps, relu):
    oh = o_ref.shape[1]
    ow = o_ref.shape[2]
    cout = o_ref.shape[3]
    cin = x_ref.shape[3]

    acc = jnp.zeros((oh * ow, cout), jnp.float32)
    for t, (dy, dx) in enumerate(taps):
        patch = x_ref[0, dy:dy + oh, dx:dx + ow, :]          # (oh, ow, cin) bf16
        a2 = patch.reshape(oh * ow, cin)
        wk = w_ref[t * cin:(t + 1) * cin, :]                  # (cin, cout) bf16
        acc = acc + jnp.dot(a2, wk, preferred_element_type=jnp.float32)

    y = acc * s_ref[...] + c_ref[...]
    if relu:
        y = jnp.maximum(y, 0.0)
    o_ref[...] = y.reshape(1, oh, ow, cout).astype(o_ref.dtype)


def _space_to_depth_weight(w):
    """(kh,kw,cin,cout) -> stride-1 weight on the 2x2 space-to-depth input."""
    kh, kw, cin, cout = w.shape
    kh2, kw2 = (kh + 1) // 2, (kw + 1) // 2
    wp = jnp.pad(w, ((0, 2 * kh2 - kh), (0, 2 * kw2 - kw), (0, 0), (0, 0)))
    w2 = wp.reshape(kh2, 2, kw2, 2, cin, cout).transpose(0, 2, 1, 3, 4, 5)
    return w2.reshape(kh2 * kw2 * 4 * cin, cout), kh2, kw2


def conv_direct_bn(x, w, scale, bias, *, stride, relu):
    """Spatial (kh>1) NHWC conv + folded BN (+ReLU) via the direct kernel."""
    n, h, win_w, cin = x.shape
    kh, kw, cin2, cout = w.shape
    assert cin == cin2
    pad = (kh - 1) // 2
    oh = (h + 2 * pad - kh) // stride + 1
    ow = (win_w + 2 * pad - kw) // stride + 1

    if stride == 1:
        x_in = jnp.pad(x, ((0, 0), (pad, pad), (pad, pad), (0, 0)))
        taps = tuple((dy, dx) for dy in range(kh) for dx in range(kw))
        wm = w.reshape(kh * kw * cin, cout)
    else:
        assert stride == 2
        # stride-2 conv == stride-1 conv on the 2x2 space-to-depth input with a
        # rearranged (partially zero-padded) weight.
        kh2, kw2 = (kh + 1) // 2, (kw + 1) // 2
        hs, ws = oh + kh2 - 1, ow + kw2 - 1
        xp = jnp.pad(x, ((0, 0),
                         (pad, 2 * hs - h - pad),
                         (pad, 2 * ws - win_w - pad),
                         (0, 0)))
        x_in = (xp.reshape(n, hs, 2, ws, 2, cin)
                  .transpose(0, 1, 3, 2, 4, 5)
                  .reshape(n, hs, ws, 4 * cin))
        wm, kh2, kw2 = _space_to_depth_weight(w)
        taps = tuple((a, b) for a in range(kh2) for b in range(kw2))

    hp, wp_, cin_eff = x_in.shape[1], x_in.shape[2], x_in.shape[3]
    kernel = functools.partial(_direct_conv_kernel, taps=taps, relu=relu)

    out = pl.pallas_call(
        kernel,
        out_shape=jax.ShapeDtypeStruct((n, oh, ow, cout), jnp.bfloat16),
        grid=(n,),
        in_specs=[
            pl.BlockSpec((1, hp, wp_, cin_eff), lambda b: (b, 0, 0, 0)),
            pl.BlockSpec((len(taps) * cin_eff, cout), lambda b: (0, 0)),
            pl.BlockSpec((1, cout), lambda b: (0, 0)),
            pl.BlockSpec((1, cout), lambda b: (0, 0)),
        ],
        out_specs=pl.BlockSpec((1, oh, ow, cout), lambda b: (b, 0, 0, 0)),
        compiler_params=pltpu.CompilerParams(
            dimension_semantics=("parallel",),
            vmem_limit_bytes=_VMEM_LIMIT),
    )(x_in.astype(jnp.bfloat16), wm.astype(jnp.bfloat16), scale, bias)
    return out


def conv_bn(x, w, scale, bias, *, stride, relu, residual=None):
    """Dispatch: 1x1 convs -> fused matmul path, spatial convs -> direct path."""
    kh, kw = w.shape[0], w.shape[1]
    if kh == 1 and kw == 1:
        if stride > 1:
            x = x[:, ::stride, ::stride, :]
        return conv1x1_bn(x, w, scale, bias, relu=relu, residual=residual)
    assert residual is None
    return conv_direct_bn(x, w, scale, bias, stride=stride, relu=relu)


# -----------------------------------------------------------------------------
# MaxPool 3x3 / stride 2 / pad 1: one fused Pallas kernel on the space-to-depth
# input (9 unit-stride window slices max-reduced on the VPU).
# -----------------------------------------------------------------------------
def _maxpool_kernel(x_ref, o_ref):
    oh = o_ref.shape[1]
    ow = o_ref.shape[2]
    combos = ((0, 0), (0, 1), (1, 0))   # (offset, parity) pairs covering taps 0..2
    r = None
    for a, p in combos:
        for b, q in combos:
            v = x_ref[0, a:a + oh, b:b + ow, 2 * p + q, :]
            r = v if r is None else jnp.maximum(r, v)
    o_ref[...] = r.reshape(1, oh, ow, r.shape[-1])


def maxpool_3x3_s2(x):
    n, h, w, c = x.shape
    oh = (h + 2 - 3) // 2 + 1
    ow = (w + 2 - 3) // 2 + 1
    neg = jnp.finfo(x.dtype).min
    hp, wp = 2 * (oh + 1), 2 * (ow + 1)
    xp = jnp.pad(x, ((0, 0), (1, hp - h - 1), (1, wp - w - 1), (0, 0)),
                 constant_values=neg)
    s = (xp.reshape(n, oh + 1, 2, ow + 1, 2, c)
           .transpose(0, 1, 3, 2, 4, 5)
           .reshape(n, oh + 1, ow + 1, 4, c))

    out = pl.pallas_call(
        _maxpool_kernel,
        out_shape=jax.ShapeDtypeStruct((n, oh, ow, c), x.dtype),
        grid=(n,),
        in_specs=[pl.BlockSpec((1, oh + 1, ow + 1, 4, c),
                               lambda b: (b, 0, 0, 0, 0))],
        out_specs=pl.BlockSpec((1, oh, ow, c), lambda b: (b, 0, 0, 0)),
        compiler_params=pltpu.CompilerParams(
            dimension_semantics=("parallel",),
            vmem_limit_bytes=_VMEM_LIMIT),
    )(s)
    return out


# -----------------------------------------------------------------------------
# ResNet-50 backbone structure (layer4 stride forced to 1 per the spec).
# -----------------------------------------------------------------------------
LAYER_CFG = ((3, 64, 1), (4, 128, 2), (6, 256, 2), (3, 512, 1))
EXPANSION = 4


def _he_conv(key, shape):
    kh, kw, cin, _ = shape
    std = (2.0 / (kh * kw * cin)) ** 0.5
    return (std * jax.random.normal(key, shape, dtype=jnp.float32)
            ).astype(jnp.bfloat16)


def _bn_affine(key, c):
    k1, k2 = jax.random.split(key)
    scale = 1.0 + 0.05 * jax.random.normal(k1, (1, c), dtype=jnp.float32)
    bias = 0.05 * jax.random.normal(k2, (1, c), dtype=jnp.float32)
    return scale, bias


def init_backbone_params(key):
    keys = iter(jax.random.split(key, 512))
    nk = lambda: next(keys)

    params = {"conv1_w": _he_conv(nk(), (7, 7, 3, 64))}
    params["bn1_s"], params["bn1_b"] = _bn_affine(nk(), 64)

    cin = 64
    for li, (nblocks, width, _stride) in enumerate(LAYER_CFG, start=1):
        blocks = []
        for bi in range(nblocks):
            p = {}
            p["conv1_w"] = _he_conv(nk(), (1, 1, cin, width))
            p["bn1_s"], p["bn1_b"] = _bn_affine(nk(), width)
            p["conv2_w"] = _he_conv(nk(), (3, 3, width, width))
            p["bn2_s"], p["bn2_b"] = _bn_affine(nk(), width)
            p["conv3_w"] = _he_conv(nk(), (1, 1, width, width * EXPANSION))
            p["bn3_s"], p["bn3_b"] = _bn_affine(nk(), width * EXPANSION)
            if bi == 0:
                p["ds_w"] = _he_conv(nk(), (1, 1, cin, width * EXPANSION))
                p["ds_s"], p["ds_b"] = _bn_affine(nk(), width * EXPANSION)
            blocks.append(p)
            cin = width * EXPANSION
        params[f"layer{li}"] = blocks
    return params


def bottleneck(x, p, stride, has_ds):
    if has_ds:
        identity = conv_bn(x, p["ds_w"], p["ds_s"], p["ds_b"],
                           stride=stride, relu=False)
    else:
        identity = x
    out = conv_bn(x, p["conv1_w"], p["bn1_s"], p["bn1_b"], stride=1, relu=True)
    out = conv_bn(out, p["conv2_w"], p["bn2_s"], p["bn2_b"],
                  stride=stride, relu=True)
    # conv3 + bn3 + residual add + final ReLU fused into one matmul epilogue.
    out = conv_bn(out, p["conv3_w"], p["bn3_s"], p["bn3_b"],
                  stride=1, relu=True, residual=identity)
    return out


def backbone_forward(params, x_nchw):
    x = jnp.transpose(x_nchw, (0, 2, 3, 1)).astype(jnp.bfloat16)  # NHWC, bf16
    # Stem.  NOTE: the reference Backbone.forward is conv1 -> bn1 -> maxpool
    # with NO ReLU (it never calls resnet.relu), so none is applied here.
    x = conv_bn(x, params["conv1_w"], params["bn1_s"], params["bn1_b"],
                stride=2, relu=False)
    x = maxpool_3x3_s2(x)

    feats = [x]  # x1
    for li, (nblocks, _width, stride) in enumerate(LAYER_CFG, start=1):
        blocks = params[f"layer{li}"]
        for bi in range(nblocks):
            x = bottleneck(x, blocks[bi], stride if bi == 0 else 1,
                           has_ds=(bi == 0))
        feats.append(x)  # x2, x3, x4, x(final)

    # Back to PyTorch's NCHW layout, f32 outputs.
    return tuple(jnp.transpose(f, (0, 3, 1, 2)).astype(jnp.float32)
                 for f in feats)


class Backbone:
    """JAX/Pallas port of the PyTorch Backbone (ResNet-50 feature pyramid)."""

    def __init__(self, key=None):
        if key is None:
            key = jax.random.PRNGKey(42)
        self.params = init_backbone_params(key)
        self._fwd = jax.jit(backbone_forward)

    def __call__(self, x):
        return self._fwd(self.params, x)


# -----------------------------------------------------------------------------
# Main
# -----------------------------------------------------------------------------
if __name__ == "__main__":
    rng = jax.random.PRNGKey(0)

    # --- unit check 1: fused matmul + affine + ReLU (exercises the N-pad path)
    ka, kb = jax.random.split(jax.random.PRNGKey(1))
    a = jax.random.normal(ka, (64, 128), jnp.float32)
    b = jax.random.normal(kb, (128, 96), jnp.float32)
    s = jnp.linspace(0.5, 1.5, 96, dtype=jnp.float32).reshape(1, 96)
    c = jnp.linspace(-1.0, 1.0, 96, dtype=jnp.float32).reshape(1, 96)
    got = matmul_affine(a, b, s, c, relu=True, out_dtype=jnp.float32)
    af = a.astype(jnp.bfloat16).astype(jnp.float32)
    bf = b.astype(jnp.bfloat16).astype(jnp.float32)
    want = jnp.maximum(
        jnp.dot(af, bf, precision=lax.Precision.HIGHEST) * s + c, 0.0)
    assert jnp.allclose(got, want, atol=3e-2, rtol=3e-2)

    # --- unit check 2: direct 3x3 conv (stride 1 and stride 2 / space-to-depth)
    def _conv_ref(x_bf16, w_bf16, s, c, stride, relu):
        xf = x_bf16.astype(jnp.float32)
        wf = w_bf16.astype(jnp.float32)
        y = lax.conv_general_dilated(
            xf, wf, window_strides=(stride, stride),
            padding=((1, 1), (1, 1)),
            dimension_numbers=("NHWC", "HWIO", "NHWC"),
            precision=lax.Precision.HIGHEST)
        y = y * s.reshape(1, 1, 1, -1) + c.reshape(1, 1, 1, -1)
        return jnp.maximum(y, 0.0) if relu else y

    kx, kw = jax.random.split(jax.random.PRNGKey(2))
    xt = jax.random.normal(kx, (2, 8, 8, 32), jnp.float32).astype(jnp.bfloat16)
    wt = (0.1 * jax.random.normal(kw, (3, 3, 32, 64), jnp.float32)
          ).astype(jnp.bfloat16)
    st = jnp.ones((1, 64), jnp.float32)
    ct = jnp.zeros((1, 64), jnp.float32)
    for stride in (1, 2):
        got_c = conv_direct_bn(xt, wt, st, ct, stride=stride, relu=True)
        want_c = _conv_ref(xt, wt, st, ct, stride, True)
        assert jnp.allclose(got_c.astype(jnp.float32), want_c,
                            atol=1e-1, rtol=1e-1)

    # --- unit check 3: fused maxpool vs reduce_window (exact)
    xm = jax.random.normal(jax.random.PRNGKey(3), (2, 16, 16, 64),
                           jnp.float32).astype(jnp.bfloat16)
    got_m = maxpool_3x3_s2(xm).astype(jnp.float32)
    want_m = lax.reduce_window(xm.astype(jnp.float32), -jnp.inf, lax.max,
                               (1, 3, 3, 1), (1, 2, 2, 1),
                               ((0, 0), (1, 1), (1, 1), (0, 0)))
    assert bool(jnp.all(got_m == want_m))

    # --- full backbone on a small deterministic NCHW input
    x = jax.random.normal(rng, (2, 3, 32, 32), dtype=jnp.float32)
    model = Backbone()
    outs = model(x)
    outs = jax.block_until_ready(outs)

    x1, x2, x3, x4, x5 = outs
    assert x1.shape == (2, 64, 8, 8)
    assert x2.shape == (2, 256, 8, 8)
    assert x3.shape == (2, 512, 4, 4)
    assert x4.shape == (2, 1024, 2, 2)
    assert x5.shape == (2, 2048, 2, 2)
    for o in outs:
        assert o.dtype == jnp.float32
        assert bool(jnp.all(jnp.isfinite(o)))

    print("KERNEL_OK")
</pallas_src>

<mosaic_0001>
module attributes {stable_mosaic.version = 11 : i64} {
  func.func @_mm_affine_kernel(%arg0: i32, %arg1: i32, %arg2: i32, %arg3: memref<32x128xbf16, #tpu.memory_space<vmem>>, %arg4: memref<128x128xbf16, #tpu.memory_space<vmem>>, %arg5: memref<1x128xf32, #tpu.memory_space<vmem>>, %arg6: memref<1x128xf32, #tpu.memory_space<vmem>>, %arg7: memref<32x128xf32, #tpu.memory_space<vmem>>, %arg8: memref<32x128xf32, #tpu.memory_space<vmem>>) attributes {dimension_semantics = [#tpu.dimension_semantics<parallel>, #tpu.dimension_semantics<parallel>, #tpu.dimension_semantics<arbitrary>], iteration_bounds = array<i64: 2, 1, 1>, scalar_prefetch = 0 : i64, scratch_operands = 1 : i64, tpu.core_type = #tpu.core_type<tc>, window_params = [{transform_indices = @transform_0, window_bounds = array<i64: 32, 128>}, {transform_indices = @transform_1, window_bounds = array<i64: 128, 128>}, {transform_indices = @transform_2, window_bounds = array<i64: 1, 128>}, {transform_indices = @transform_3, window_bounds = array<i64: 1, 128>}, {transform_indices = @transform_4, window_bounds = array<i64: 32, 128>}]} {
    %c0_i32 = arith.constant 0 : i32
    %0 = arith.cmpi eq, %arg2, %c0_i32 : i32
    %1 = arith.extui %0 : i1 to i32
    %c0_i32_0 = arith.constant 0 : i32
    %2 = arith.cmpi ne, %1, %c0_i32_0 : i32
    scf.if %2 {
      %cst_10 = arith.constant 0.000000e+00 : f32
      %12 = vector.broadcast %cst_10 : f32 to vector<32x128xf32>
      %c0_11 = arith.constant 0 : index
      %c0_12 = arith.constant 0 : index
      %13 = vector.load %arg8[%c0_11, %c0_12] : memref<32x128xf32, #tpu.memory_space<vmem>>, vector<32x128xf32>
      tpu.vector_store %arg8[%c0_11, %c0_12], %12 {strides = array<i32>} : memref<32x128xf32, #tpu.memory_space<vmem>>, vector<32x128xf32>,
    } else {
    }
    %c0 = arith.constant 0 : index
    %c0_1 = arith.constant 0 : index
    %3 = vector.load %arg8[%c0, %c0_1] : memref<32x128xf32, #tpu.memory_space<vmem>>, vector<32x128xf32>
    %c0_2 = arith.constant 0 : index
    %c0_3 = arith.constant 0 : index
    %4 = vector.load %arg3[%c0_2, %c0_3] : memref<32x128xbf16, #tpu.memory_space<vmem>>, vector<32x128xbf16>
    %c0_4 = arith.constant 0 : index
    %c0_5 = arith.constant 0 : index
    %5 = vector.load %arg4[%c0_4, %c0_5] : memref<128x128xbf16, #tpu.memory_space<vmem>>, vector<128x128xbf16>
    %cst = arith.constant dense<0.000000e+00> : vector<32x128xf32>
    %6 = tpu.matmul %4, %5, %cst {dimension_numbers = #tpu.dot_dimension_numbers<[1], [0], [0], [1], [0, 0, 1, 1], [], []>} : vector<32x128xbf16>, vector<128x128xbf16>, vector<32x128xf32> -> vector<32x128xf32>
    %7 = arith.addf %3, %6 : vector<32x128xf32>
    %c0_6 = arith.constant 0 : index
    %c0_7 = arith.constant 0 : index
    %8 = vector.load %arg8[%c0_6, %c0_7] : memref<32x128xf32, #tpu.memory_space<vmem>>, vector<32x128xf32>
    tpu.vector_store %arg8[%c0_6, %c0_7], %7 {strides = array<i32>} : memref<32x128xf32, #tpu.memory_space<vmem>>, vector<32x128xf32>,
    %c0_i32_8 = arith.constant 0 : i32
    %9 = arith.cmpi eq, %arg2, %c0_i32_8 : i32
    %10 = arith.extui %9 : i1 to i32
    %c0_i32_9 = arith.constant 0 : i32
    %11 = arith.cmpi ne, %10, %c0_i32_9 : i32
    scf.if %11 {
      %c0_10 = arith.constant 0 : index
      %c0_11 = arith.constant 0 : index
      %12 = vector.load %arg8[%c0_10, %c0_11] : memref<32x128xf32, #tpu.memory_space<vmem>>, vector<32x128xf32>
      %c0_12 = arith.constant 0 : index
      %c0_13 = arith.constant 0 : index
      %13 = vector.load %arg5[%c0_12, %c0_13] : memref<1x128xf32, #tpu.memory_space<vmem>>, vector<1x128xf32>
      %14 = vector.broadcast %13 : vector<1x128xf32> to vector<32x128xf32>
      %15 = arith.mulf %12, %14 : vector<32x128xf32>
      %c0_14 = arith.constant 0 : index
      %c0_15 = arith.constant 0 : index
      %16 = vector.load %arg6[%c0_14, %c0_15] : memref<1x128xf32, #tpu.memory_space<vmem>>, vector<1x128xf32>
      %17 = vector.broadcast %16 : vector<1x128xf32> to vector<32x128xf32>
      %18 = arith.addf %15, %17 : vector<32x128xf32>
      %cst_16 = arith.constant 0.000000e+00 : f32
      %19 = vector.broadcast %cst_16 : f32 to vector<32x128xf32>
      %20 = arith.maximumf %18, %19 : vector<32x128xf32>
      %c0_17 = arith.constant 0 : index
      %c0_18 = arith.constant 0 : index
      %21 = vector.load %arg7[%c0_17, %c0_18] : memref<32x128xf32, #tpu.memory_space<vmem>>, vector<32x128xf32>
      tpu.vector_store %arg7[%c0_17, %c0_18], %20 {strides = array<i32>} : memref<32x128xf32, #tpu.memory_space<vmem>>, vector<32x128xf32>,
    } else {
    }
    return
  }
  func.func @transform_0(%arg0: i32, %arg1: i32, %arg2: i32) -> (i32, i32) {
    %c0_i32 = arith.constant 0 : i32
    return %arg0, %arg2 : i32, i32
  }
  func.func @transform_1(%arg0: i32, %arg1: i32, %arg2: i32) -> (i32, i32) {
    %c0_i32 = arith.constant 0 : i32
    return %arg2, %arg1 : i32, i32
  }
  func.func @transform_2(%arg0: i32, %arg1: i32, %arg2: i32) -> (i32, i32) {
    %c0_i32 = arith.constant 0 : i32
    %c0_i32_0 = arith.constant 0 : i32
    return %c0_i32, %arg1 : i32, i32
  }
  func.func @transform_3(%arg0: i32, %arg1: i32, %arg2: i32) -> (i32, i32) {
    %c0_i32 = arith.constant 0 : i32
    %c0_i32_0 = arith.constant 0 : i32
    return %c0_i32, %arg1 : i32, i32
  }
  func.func @transform_4(%arg0: i32, %arg1: i32, %arg2: i32) -> (i32, i32) {
    %c0_i32 = arith.constant 0 : i32
    return %arg0, %arg1 : i32, i32
  }
}

</mosaic_0001>

<bundles_post_ra>
// kernel: tpu_custom_call.1
= control target key start
LH: loop header
LB: loop body
LE: loop exit
PB: predicated region body
PF: predicated region fallthrough
CT: control target
= control target key end

     0   :  { %9 = vsyncpa [#allocation4], 0  ;;  %s1185_s0 = inlined_call_operand.hbm [shape: bf16[64,128], index: 0, kind: input, shape index: {}]   ;;  %s1186_s1 = inlined_call_operand.hbm [shape: bf16[128,128], index: 1, kind: input, shape index: {}]   ;;  %s1187_s2 = inlined_call_operand.vmem [shape: f32[1,128], index: 2, kind: input, shape index: {}]   ;;  %s1188_s3 = inlined_call_operand.vmem [shape: f32[1,128], index: 3, kind: input, shape index: {}]   ;;  %s1189_s4 = inlined_call_operand.hbm [shape: f32[64,128], index: 4, kind: output, shape index: {}]  }
   0x1   :  { %11 = vsyncpa [#allocation4 + $0x1], 0 }
   0x2   :  { %12 = vsyncpa [#allocation7], 0 }
   0x3   :  { %13 = vsyncpa [#allocation5], 0 }
   0x4   :  { %15 = vsyncpa [#allocation5 + $0x1], 0  ;;  %s953_s15 = smov 0   ;;  %s955_s16 = smov 0  }
   0x5   :  { %s957_s17 = smov 0   ;;  %s959_s18 = smov 0  }
   0x6   :  { %s961_s19 = smov 0   ;;  %s963_s20 = smov 0  }
   0x7 LB: > { %s625_s21 = sadd.s32 4294967295, %s919_s20   ;;  %s626_s22 = sadd.s32 4294967294, %s919_s20   ;;  %s919_s20 = sphi %s963_s20, %s21_s20   ;;  %s915_s19 = sphi %s961_s19, %s1213_s19   ;;  %s911_s18 = sphi %s959_s18, %s1212_s18   ;;  %s907_s17 = sphi %s957_s17, %s1211_s17   ;;  %s903_s16 = sphi %s955_s16, %s1210_s16   ;;  %s899_s15 = sphi %s953_s15, %s1209_s15  }
   0x8   : > { %p62_p0 = scmp.ne.s32.totalorder %s903_s16, %s899_s15  ;;  %p987_p1 = scmp.eq.s32.totalorder %s625_s21, 0 }
   0x9   : > { %p991_p2 = scmp.eq.s32.totalorder %s625_s21, 1  ;;  %p174_p3 = scmp.eq.s32.totalorder %s626_s22, 1 }
   0xa   : > { %s1194_s23 = scalar_select %p987_p1, 1, 0 }
   0xb   : > { %s1195_s24 = scalar_select %p991_p2, 1, 0 }
   0xc   : > { %p997_p4 = por %p987_p1, %p62_p0  ;;  %p627_p5 = scmp.ge.s32.totalorder %s919_s20, 1 }
   0xd   : > { %p1002_p6 = por %p174_p3, %p62_p0  ;;  %p181_p7 = scmp.lt.s32.totalorder %s919_s20, 3 }
   0xe   : > { %s1196_s25 = scalar_select %p997_p4, 1, 0 }
   0xf   : > { %s1197_s26 = scalar_select %p1002_p6, 1, 0 }
  0x10   : > { %p1007_p8 = pnand %p627_p5, %p181_p7  ;;  %s921_s28 = smov [#allocation6]  }
  0x11   : > { %s197_s29 = sshll.u32 %s921_s28, 4  ;;  %s40_s5 = sadd.s32 1, %s915_s19  ;;  %s198_s29 = int_to_ptr.vmem [resolvable:$true] %s197_s29 }
  0x12   : > { %s1198_s27 = scalar_select %p1007_p8, 1, 0 }
  0x13   : > { %p696_p9 = pneg %p1007_p8  ;;  %s775_s8 = scalar_lea.hbm %s1186_s1, 1024 }
  0x14   : > { %p776_p12 = scmp.ne.s32.totalorder %s1186_s1, %s775_s8  ;;  %p782_p5 = scmp.lt.u32.totalorder %s775_s8, %s1186_s1 }
  0x15   : > { %p1016_p11 = pnand %p696_p9, %p987_p1 }
  0x17   : > { %p777_p13 = pneg %p1016_p11 }
  0x19   : > { %p778_p0 = pnand %p777_p13, %p776_p12 }
  0x1b   : > { %p779_p3 = pneg %p778_p0 }
  0x1d   : > { %p784_p7 = pnand %p782_p5, %p779_p3 }
  0x1f   : > { %787 = shalt.err (!%p784_p7)
}
  0x20   : > { %s788_s13 = scalar_lea.vmem %s198_s29, 1024  ;;  %p796_p1 = scmp.lt.s32.totalorder %s198_s29, %s198_s29 }
  0x21   : > { %p789_p9 = scmp.ne.s32.totalorder %s198_s29, %s788_s13  ;;  %p797_p4 = scmp.lt.s32.totalorder %s788_s13, %s788_s13 }
  0x23   : > { %p791_p10 = pnand %p789_p9, %p777_p13  ;;  %p798_p8 = por %p797_p4, %p796_p1 }
  0x25   : > { %p792_p6 = pneg %p791_p10 }
  0x27   : > { %p799_p2 = pnand %p798_p8, %p792_p6 }
  0x29   : > { %802 = shalt.err (!%p799_p2)
}
  0x2a   : > { %s922_s14 = smov 64   ;;  %s923_s21 = smov 4  }
  0x2b   : > { %699 = dma.hbm_to_vmem [thread:$0]  (!%p1016_p11), %s1186_s1, 1024, %s198_s29, [#allocation7], %s922_s14, %s922_s14, %s923_s21  }
  0x2c   : > { %p42_p1 = scmp.ge.s32.totalorder %s40_s5, 2  ;;  %s49_s6 = sadd.s32 1, %s907_s17 }
  0x2d   : > { %p56_p2 = scmp.ne.s32.totalorder %s907_s17, %s903_s16  ;;  %p57_p4 = scmp.eq.s32.totalorder %s919_s20, 0 }
  0x2e   : > { %s1215_s5 = smov (%p42_p1, %s40_s5), 0  ;;  %p1201_p8 = scmp.ne.s32.totalorder %s1195_s24, 0 }
  0x2f   : > { %p1046_p6 = por %p57_p4, %p56_p2  ;;  %s44_s8 = ssub.s32 %s915_s19, %s1215_s5 }
  0x30   : > { %p1052_p10 = por %p1201_p8, %p56_p2  ;;  %p709_p12 = scmp.lt.s32.totalorder %s919_s20, 2 }
  0x31   : > { %p47_p11 = scmp.eq.s32.totalorder %s44_s8, 0  ;;  %s223_s29 = sand.u32 1, %s907_s17  }
  0x32   : > { %s632_s9 = sshll.u32 %s223_s29, 4  ;;  %s656_s11 = sshll.u32 %s915_s19, 8 }
  0x33   : > { %s1061_s10 = scalar_select %p47_p11, %s907_s17, %s49_s6  }
  0x34   : > { %s1067_s22 = scalar_lea.hbm %s1185_s0, %s656_s11  ;;  %s227_s24 = scalar_lea.vmem [#allocation3], %s632_s9 }
  0x35   : > { %s235_s28 = sshll.u32 %s227_s24, 4  ;;  %p1073_p13 = pnand %p709_p12, %p1046_p6  ;;  %s1069_s28 = int_to_ptr.vmem [resolvable:$true] %s235_s28 }
  0x36   : > { %s1077_s6 = scalar_lea.sflag [#allocation4], %s223_s29  ;;  %s803_s12 = scalar_lea.hbm %s1067_s22, 256 }
  0x37   : > { %p804_p0 = scmp.ne.s32.totalorder %s1067_s22, %s803_s12  ;;  %p805_p3 = pneg %p1073_p13 }
  0x38   : > { %s808_s7 = scalar_lea.hbm %s1185_s0, 512  ;;  %p809_p9 = scmp.lt.u32.totalorder %s1067_s22, %s1185_s0 }
  0x39   : > { %p806_p5 = pnand %p805_p3, %p804_p0  ;;  %p810_p1 = scmp.lt.u32.totalorder %s808_s7, %s803_s12 }
  0x3a   : > { %p812_p4 = scmp.lt.u32.totalorder %s803_s12, %s1067_s22 }
  0x3b   : > { %p807_p7 = pneg %p806_p5  ;;  %p811_p2 = por %p810_p1, %p809_p9 }
  0x3d   : > { %p813_p6 = por %p812_p4, %p811_p2 }
  0x3f   : > { %p814_p8 = pnand %p813_p6, %p807_p7 }
  0x41   : > { %817 = shalt.err (!%p814_p8)
}
  0x42   : > { %s818_s29 = scalar_lea.vmem %s1069_s28, 256  ;;  %s924_s9 = smov [#allocation3]  }
  0x43   : > { %p819_p12 = scmp.ne.s32.totalorder %s1069_s28, %s818_s29  ;;  %s823_s11 = sshll.u32 %s924_s9, 4  ;;  %s824_s11 = int_to_ptr.vmem [resolvable:$false] %s823_s11 }
  0x44   : > { %s825_s13 = scalar_lea.vmem %s824_s11, 512  ;;  %p826_p5 = scmp.lt.s32.totalorder %s1069_s28, %s824_s11 }
  0x45   : > { %p821_p11 = pnand %p819_p12, %p805_p3  ;;  %p827_p9 = scmp.lt.s32.totalorder %s825_s13, %s818_s29 }
  0x47   : > { %p822_p0 = pneg %p821_p11  ;;  %p828_p1 = por %p827_p9, %p826_p5 }
  0x49   : > { %p829_p2 = pnand %p828_p1, %p822_p0 }
  0x4b   : > { %832 = shalt.err (!%p829_p2)
}
  0x4c   : > { %703 = dma.hbm_to_vmem [thread:$0]  (!%p1073_p13), %s1067_s22, 256, %s1069_s28, %s1077_s6, %s922_s14, %s922_s14, %s923_s21  }
  0x4d   : > { %p1204_p3 = scmp.ne.s32.totalorder %s1198_s27, 0 }
  0x4e   : > { %s1111_s12 = sand.u32 (!%p1204_p3), 1, %s903_s16   ;;  %p1205_p7 = scmp.ne.s32.totalorder (!%p1204_p3), %s1196_s25, 0 }
  0x4f   : > { %247 = sbr.rel (%p1204_p3) target bundleno = 359 (0x167), region = 36  ;;  %s636_s7 = sshll.u32 (!%p1204_p3), %s1111_s12, 4 }
  0x50   : > { %s250_s24 = scalar_lea.sflag (!%p1204_p3), [#allocation4], %s1111_s12  ;;  %s253_s29 = scalar_lea.vmem (!%p1204_p3), [#allocation3], %s636_s7 }
  0x56   : > { %886 = dma.done.wait (%p1205_p7), %s250_s24, 256  }
  0x57   : > { %888 = vsyncadd (%p1205_p7), %s250_s24, 4294967040  ;;  %p1206_p4 = scmp.ne.s32.totalorder %s1194_s23, 0 }
  0x59   : > { %890 = dma.done.wait (%p1206_p4), [#allocation7], 1024  }
  0x5a   : > { %892 = vsyncadd (%p1206_p4), [#allocation7], 4294966272  ;;  %v765_v0 = vld [vmem:[#allocation6] sm:$0xff]   ;;  %v766_v1 = vld [vmem:[#allocation6 + $0x8] sm:$0xff]   ;;  %s638_s27 = sshll.u32 %s1111_s12, 5  ;;  %s657_s8 = sshll.u32 %s911_s18, 9 }
  0x5b   : > { %668 = vmatprep.subr.bf16.mxu0 %v765_v0  ;;  %v767_v2 = vld [vmem:[#allocation6 + $0x10] sm:$0xff]   ;;  %v768_v3 = vld [vmem:[#allocation6 + $0x18] sm:$0xff]   ;;  %v769_v5 = vld [vmem:[#allocation6 + $0x20] sm:$0xff]   ;;  %s287_s22 = scalar_lea.vmem [#allocation8], %s638_s27  ;;  %s1136_s11 = scalar_lea.hbm %s1189_s4, %s657_s8 }
  0x5c   : > { %669 = vmatpush3.bf16.msra.mxu0 %v765_v0  ;;  %v773_v4 = vld [vmem:[%s253_s29] sm:$0xff]   ;;  %v770_v6 = vld [vmem:[#allocation6 + $0x28] sm:$0xff]   ;;  %v772_v8 = vld [vmem:[#allocation6 + $0x38] sm:$0xff]   ;;  %s499_s28 = sshll.u32 %s287_s22, 4  ;;  %s485_s18 = scalar_lea.sflag [#allocation5], %s1111_s12  ;;  %s1131_s28 = int_to_ptr.vmem [resolvable:$true] %s499_s28 }
  0x5d   : > { %670 = vmatprep.subr.bf16.mxu0 %v766_v1  ;;  %684 = vmatprep.mubr.bf16.mxu0 %v773_v4  ;;  %v771_v7 = vld [vmem:[#allocation6 + $0x30] sm:$0xff]   ;;  %v774_v9 = vld [vmem:[%s253_s29 + $0x8] sm:$0xff]   ;;  %v649_v10 = vld [vmem:[%s1187_s2] ss:$0 sm:$0xff]  ;;  %s833_s13 = scalar_lea.vmem %s1131_s28, 512  ;;  %s925_s7 = smov [#allocation8]  }
  0x5e   : > { %v650_v12 = vld [vmem:[%s1188_s3] ss:$0 sm:$0xff]  ;;  %p834_p13 = scmp.ne.s32.totalorder %s1131_s28, %s833_s13  ;;  %s837_s24 = sshll.u32 %s925_s7, 4  ;;  %s838_s24 = int_to_ptr.vmem [resolvable:$false] %s837_s24 }
  0x5f   : > { %s839_s29 = scalar_lea.vmem %s838_s24, 1024  ;;  %p840_p12 = scmp.lt.s32.totalorder %s1131_s28, %s838_s24 }
  0x60   : > { %671 = vmatpush3.bf16.msra.mxu0 %v766_v1  ;;  %p835_p6 = pnand %p834_p13, %p1052_p10  ;;  %p841_p11 = scmp.lt.s32.totalorder %s839_s29, %s833_s13 }
  0x61   : > { %672 = vmatprep.subr.bf16.mxu0 %v767_v2 }
  0x62   : > { %p836_p8 = pneg %p835_p6  ;;  %p842_p0 = por %p841_p11, %p840_p12 }
  0x64   : > { %673 = vmatpush3.bf16.msra.mxu0 %v767_v2  ;;  %p843_p5 = pnand %p842_p0, %p836_p8 }
  0x65   : > { %674 = vmatprep.subr.bf16.mxu0 %v768_v3 }
  0x68   : > { %675 = vmatpush3.bf16.msra.mxu0 %v768_v3 }
  0x69   : > { %676 = vmatprep.subr.bf16.mxu0 %v769_v5 }
  0x6c   : > { %677 = vmatpush3.bf16.msra.mxu0 %v769_v5 }
  0x6d   : > { %678 = vmatprep.subr.bf16.mxu0 %v770_v6 }
  0x70   : > { %679 = vmatpush3.bf16.msra.mxu0 %v770_v6 }
  0x71   : > { %680 = vmatprep.subr.bf16.mxu0 %v771_v7 }
  0x74   : > { %681 = vmatpush3.bf16.msra.mxu0 %v771_v7 }
  0x75   : > { %682 = vmatprep.subr.bf16.mxu0 %v772_v8 }
  0x78   : > { %683 = vmatpush3.bf16.msra.mxu0 %v772_v8 }
  0x7b   : > { %685 = vmatmul.mubr.bf16.vlgmr.msra.gmra.mrb[0].mxu0 %v774_v9 }
 0x14e   : > { %v686_v11 = vpop.f32.mrb[0].mxu0 }
 0x14f   : > { %v463_v13 = vmul.f32 %v686_v11, %v649_v10  ;;  %v424_v14 = vpop.f32.mrb[1].mxu0 }
 0x150   : > { %v461_v15 = vmul.f32 %v649_v10, %v424_v14  ;;  %v687_v16 = vpop.f32.mrb[2].mxu0 }
 0x151   : > { %v474_v17 = vadd.f32 %v650_v12, %v463_v13  ;;  %v464_v18 = vmul.f32 %v687_v16, %v649_v10  ;;  %v427_v19 = vpop.f32.mrb[3].mxu0 }
 0x152   : > { %v472_v20 = vadd.f32 %v650_v12, %v461_v15  ;;  %v462_v21 = vmul.f32 %v649_v10, %v427_v19 }
 0x153   : > { %v478_v22 = vmax.f32 %v474_v17, 0.0  ;;  %v475_v23 = vadd.f32 %v650_v12, %v464_v18 }
 0x154   : > { %v476_v24 = vmax.f32 %v472_v20, 0.0  ;;  %v473_v25 = vadd.f32 %v650_v12, %v462_v21 }
 0x155   : > { %482 = vst [vmem:[%s287_s22 + $0x10] sm:$0xff] %v478_v22  ;;  %v479_v26 = vmax.f32 %v475_v23, 0.0 }
 0x156   : > { %480 = vst [vmem:[%s287_s22] sm:$0xff] %v476_v24  ;;  %v477_v27 = vmax.f32 %v473_v25, 0.0 }
 0x157   : > { %483 = vst [vmem:[%s287_s22 + $0x18] sm:$0xff] %v479_v26 }
 0x158   : > { %481 = vst [vmem:[%s287_s22 + $0x8] sm:$0xff] %v477_v27 }
 0x159   : > { %846 = shalt.err (!%p843_p5)
}
 0x15a   : > { %s847_s23 = scalar_lea.hbm %s1136_s11, 512  ;;  %s851_s14 = scalar_lea.hbm %s1189_s4, 1024 }
 0x15b   : > { %p848_p9 = scmp.ne.s32.totalorder %s1136_s11, %s847_s23  ;;  %p852_p3 = scmp.lt.u32.totalorder %s1136_s11, %s1189_s4 }
 0x15c   : > { %p853_p7 = scmp.lt.u32.totalorder %s851_s14, %s847_s23  ;;  %p855_p13 = scmp.lt.u32.totalorder %s847_s23, %s1136_s11 }
 0x15d   : > { %p849_p1 = pnand %p848_p9, %p1052_p10 }
 0x15e   : > { %p854_p4 = por %p853_p7, %p852_p3 }
 0x15f   : > { %p850_p2 = pneg %p849_p1 }
 0x160   : > { %p856_p6 = por %p855_p13, %p854_p4 }
 0x162   : > { %p857_p8 = pnand %p856_p6, %p850_p2 }
 0x164   : > { %860 = shalt.err (!%p857_p8)
}
 0x165   : > { %s926_s8 = smov 128   ;;  %s927_s6 = smov 8  }
 0x166   : > { %694 = dma.vmem_to_hbm [thread:$0]  (%p1052_p10), %s1131_s28, 512, %s1136_s11, %s485_s18, %s926_s8, %s926_s8, %s927_s6  }
 0x167 PF: > { %s514_s9 = sand.u32 1, %s899_s15   ;;  %p1207_p12 = scmp.ne.s32.totalorder %s1197_s26, 0 }
 0x168   : > { %p1208_p11 = scmp.ge.s32.totalorder %s919_s20, 2  ;;  %s515_s13 = scalar_lea.sflag [#allocation5], %s514_s9 }
 0x16a   : > { %p705_p0 = pnand %p1208_p11, %p1207_p12 }
 0x16c   : > { %894 = dma.done.wait (!%p705_p0), %s515_s13, 512  }
 0x16d   : > { %896 = vsyncadd (!%p705_p0), %s515_s13, 4294966784  ;;  %s21_s20 = sadd.s32 1, %s919_s20   ;;  %s1209_s15 = smov %s903_s16 }
 0x16e   : > { %p18_p5 = scmp.ge.s32.totalorder %s21_s20, 4   ;;  %s1210_s16 = smov %s907_s17 }
 0x16f   : > { %s1211_s17 = smov %s1061_s10  ;;  %s1212_s18 = smov %s915_s19 }
 0x170   : > { %s1213_s19 = smov %s1215_s5  ;;  %20 = sbr.rel (!%p18_p5) target bundleno = 7 (0x7), region = 100 }
 0x177   :  { %520 = vsyncpa [#allocation4], 1 }
 0x178   :  { %522 = vsyncpa [#allocation4 + $0x1], 1 }
 0x179   :  { %523 = vsyncpa [#allocation7], 1 }
 0x17a   :  { %524 = vsyncpa [#allocation5], 1 }
 0x17b   :  { %526 = vsyncpa [#allocation5 + $0x1], 1 }

</bundles_post_ra>
